<compile_context>
chip_gen: v6e
topology: v6e:2x2x1
jax: 0.10.0
libtpu: 0.0.40
codegen_flags: <defaults>
</compile_context>

<pallas_src>
import functools

import jax
import jax.numpy as jnp
from jax.experimental import pallas as pl
from jax.experimental.pallas import tpu as pltpu


def _round_up(x, m):
    return ((x + m - 1) // m) * m


def _vmem_capacity_bytes():
    """Physical VMEM per TensorCore; conservative fallback if the query fails."""
    try:
        cap = getattr(pltpu.get_tpu_info(), "vmem_capacity_bytes", None)
        if cap:
            return int(cap)
    except Exception:
        pass
    return 64 * 1024 * 1024  # v7x per-TC VMEM (smallest current generation)


def _pick_block_b(B, S, E, itemsize, requested=None):
    """Batch rows per grid step: big enough to stream MiBs of X, VMEM-gated."""
    b_ceil = _round_up(max(int(B), 1), 8)
    if requested is not None:
        return _round_up(max(8, min(int(requested), b_ceil)), 8)
    cap = _vmem_capacity_bytes()
    budget = max(cap // 2 - (8 << 20), 8 << 20)
    # Per batch row: double-buffered storage-dtype X block + ~2 f32 (S,E)
    # temporaries (inline upcast + broadcast product) + small (E,) vectors.
    bytes_per_row = S * E * (2 * itemsize + 2 * 4) + 6 * E * 4
    bb = budget // max(bytes_per_row, 1)
    bb = max(8, min(int(bb), 2048, b_ceil))
    if bb >= 128:
        bb = (bb // 128) * 128   # keep batch blocks lane-friendly multiples of 128
    else:
        bb = _round_up(bb, 8)
    return int(bb)


def _rum_kernel(x_ref, y_ref, u_ref, out_ref, *, beta, alpha):
    # x_ref: (bb, S, E)  history item embeddings (storage dtype, e.g. bf16)
    # y_ref: (bb, E)     target item embeddings
    # u_ref: (bb, E)     user embeddings
    # out_ref: (bb, 1)   sigmoid scores
    x = x_ref[...]                                   # (bb, S, E) storage dtype
    xf = x.astype(jnp.float32)                       # single upcast, reused twice
    yf = y_ref[...].astype(jnp.float32)              # (bb, E)
    uf = u_ref[...].astype(jnp.float32)              # (bb, E)

    # w[b, s] = <x[b, s, :], y[b, :]> * beta  -- VPU mul + lane (E) reduce;
    # f32 elementwise math (bf16 VALU unsupported on v5e, and keeps accuracy).
    w = jnp.sum(xf * yf[:, None, :], axis=-1) * beta          # (bb, S)

    # Numerically stable softmax over S (exp -> EUP; divide -> EUP reciprocal
    # with one Newton refinement for ~f32 accuracy).
    w_max = jnp.max(w, axis=-1, keepdims=True)                 # (bb, 1)
    e = jnp.exp(w - w_max)                                     # (bb, S)
    denom = jnp.sum(e, axis=-1, keepdims=True)                 # (bb, 1)
    inv = pl.reciprocal(denom, approx=True)
    inv = inv * (2.0 - denom * inv)                            # Newton refine
    z = e * inv                                                # (bb, S)

    # p[b, e] = sum_s z[b, s] * x[b, s, e]  -- VPU mul + sublane (S) reduce,
    # reusing the already-loaded block (no second ref read, no MXU).
    p = jnp.sum(xf * z[:, :, None], axis=1)                    # (bb, E)

    p_u = p * alpha + uf                                       # (bb, E)
    logits = jnp.sum(p_u * yf, axis=-1, keepdims=True)         # (bb, 1)
    out_ref[...] = jax.nn.sigmoid(logits)


def rum_forward_pallas(u_emb, x_emb, y_emb, *, beta=1.0, alpha=1.0, block_b=None):
    """Score one (user, history, target) triple per batch row -> (B,) float32."""
    B, S, E = x_emb.shape
    itemsize = x_emb.dtype.itemsize
    block_b = _pick_block_b(B, S, E, itemsize, requested=block_b)
    b_pad = _round_up(B, block_b)
    grid_b = b_pad // block_b

    if b_pad != B:
        pad = b_pad - B
        # Zero padding is benign: zero embeddings give uniform softmax, zero p,
        # zero logits -> sigmoid 0.5, and the rows are sliced off below.
        x_emb = jnp.pad(x_emb, ((0, pad), (0, 0), (0, 0)))
        y_emb = jnp.pad(y_emb, ((0, pad), (0, 0)))
        u_emb = jnp.pad(u_emb, ((0, pad), (0, 0)))

    kernel = functools.partial(_rum_kernel, beta=float(beta), alpha=float(alpha))

    # Per-step VMEM footprint: double-buffered X block + f32 temporaries + small
    # y/u/output buffers; clamp the scoped limit below physical VMEM (v7x 64 MiB).
    x_block_bytes = block_b * S * E * itemsize
    est = (2 * x_block_bytes
           + 2 * block_b * S * E * 4
           + 8 * block_b * E * 4
           + 4 * block_b * E * itemsize)
    vmem_cap = _vmem_capacity_bytes()
    vmem_limit = int(min(max(vmem_cap - (16 << 20), 32 << 20),
                         max(32 << 20, int(est * 1.5) + (8 << 20))))

    cost = pl.CostEstimate(
        flops=int(4 * b_pad * S * E + 6 * b_pad * E + 6 * b_pad * S),
        transcendentals=int(b_pad * S + 3 * b_pad),
        bytes_accessed=int(b_pad * S * E * itemsize
                           + 2 * b_pad * E * itemsize
                           + b_pad * 4),
    )

    out = pl.pallas_call(
        kernel,
        out_shape=jax.ShapeDtypeStruct((b_pad, 1), jnp.float32),
        grid_spec=pltpu.PrefetchScalarGridSpec(
            num_scalar_prefetch=0,
            grid=(grid_b,),
            in_specs=[
                # TODO(synk): if a profile still shows exposed X DMA at large
                # block_b, add pipeline_mode=pl.Buffered(3) on this spec only.
                pl.BlockSpec((block_b, S, E), lambda i: (i, 0, 0)),
                pl.BlockSpec((block_b, E), lambda i: (i, 0)),
                pl.BlockSpec((block_b, E), lambda i: (i, 0)),
            ],
            out_specs=pl.BlockSpec((block_b, 1), lambda i: (i, 0)),
        ),
        compiler_params=pltpu.CompilerParams(
            # Independent batch blocks -> megacore sharding on v7x; no-op on
            # single-TC v5e/v6e. TODO(synk): switch to pltpu.CORE_PARALLEL if a
            # v7x profile shows only one TensorCore busy.
            dimension_semantics=("parallel",),
            vmem_limit_bytes=vmem_limit,
        ),
        cost_estimate=cost,
    )(x_emb, y_emb, u_emb)

    return out.reshape(b_pad)[:B]


class RUMPallas:
    """Deterministically-initialized JAX/Pallas port of the PyTorch RUM module."""

    def __init__(self, item_num, user_num, emb_size, alpha=0.2, beta=1):
        key = jax.random.PRNGKey(0)
        k_item, k_user = jax.random.split(key)
        item_tbl = jax.random.normal(k_item, (item_num + 1, emb_size), jnp.float32)
        item_tbl = item_tbl.at[0].set(0.0)          # padding_idx=0 -> zero row
        # Store / stream embeddings as bf16: the kernel is HBM-bandwidth bound;
        # all in-kernel math runs in f32.
        self.item_emb = item_tbl.astype(jnp.bfloat16)
        self.user_emb = jax.random.normal(
            k_user, (user_num, emb_size), jnp.float32).astype(jnp.bfloat16)
        self.beta = beta
        self.alpha = 1   # matches the PyTorch module (__init__ overrides alpha to 1)

    def forward(self, u, X, y, *, block_b=None):
        # Embedding gathers (plain-JAX glue).
        # TODO(synk): fuse the X gather into the kernel (scalar-prefetch indices
        # + per-row DMA from the HBM item table) once E is large enough that a
        # gathered row exceeds ~1 KiB; at E=128 each row is 256 B and the gather
        # would be DMA-descriptor bound.
        u_emb = jnp.take(self.user_emb, u.astype(jnp.int32), axis=0)     # (B, E)
        X_emb = jnp.take(self.item_emb, X.astype(jnp.int32), axis=0)     # (B, S, E)
        y_emb = jnp.take(self.item_emb, y.astype(jnp.int32), axis=0)     # (B, E)
        return rum_forward_pallas(u_emb, X_emb, y_emb,
                                  beta=self.beta, alpha=self.alpha,
                                  block_b=block_b)


def _reference_forward(model, u, X, y):
    """Pure-JAX reference matching the PyTorch forward (f32 math on bf16 tables)."""
    u_emb = jnp.take(model.user_emb, u.astype(jnp.int32), axis=0).astype(jnp.float32)
    X_emb = jnp.take(model.item_emb, X.astype(jnp.int32), axis=0).astype(jnp.float32)
    y_emb = jnp.take(model.item_emb, y.astype(jnp.int32), axis=0).astype(jnp.float32)
    w = jnp.einsum("bse,be->bs", X_emb, y_emb) * model.beta
    z = jax.nn.softmax(w, axis=1)
    p = jnp.sum(X_emb * z[:, :, None], axis=1)
    p_u = p * model.alpha + u_emb
    return jax.nn.sigmoid(jnp.diagonal(p_u @ y_emb.T))


if __name__ == "__main__":
    item_num, user_num, emb_size = 50, 10, 128     # E = 128 -> lane-dense vregs
    B, S = 20, 8

    model = RUMPallas(item_num, user_num, emb_size)

    key = jax.random.PRNGKey(0)
    ku, kx, ky = jax.random.split(key, 3)
    u = jax.random.randint(ku, (B,), 0, user_num, dtype=jnp.int32)
    X = jax.random.randint(kx, (B, S), 0, item_num + 1, dtype=jnp.int32)
    y = jax.random.randint(ky, (B,), 1, item_num + 1, dtype=jnp.int32)

    y_ref = _reference_forward(model, u, X, y)

    # Small block_b exercises the multi-step grid + batch-padding path.
    y_hat_small = model.forward(u, X, y, block_b=8)
    jax.block_until_ready(y_hat_small)
    assert y_hat_small.shape == (B,)
    assert y_hat_small.dtype == jnp.float32
    assert jnp.allclose(y_hat_small, y_ref, atol=1e-3, rtol=1e-3), (y_hat_small, y_ref)

    # Default (auto, per-chip) block size path.
    y_hat_auto = model.forward(u, X, y)
    jax.block_until_ready(y_hat_auto)
    assert jnp.allclose(y_hat_auto, y_ref, atol=1e-3, rtol=1e-3), (y_hat_auto, y_ref)

    print("KERNEL_OK")
</pallas_src>

<mosaic_0001>
module attributes {stable_mosaic.version = 11 : i64} {
  func.func @_rum_kernel(%arg0: i32, %arg1: memref<8x8x128xbf16, #tpu.memory_space<vmem>>, %arg2: memref<8x128xbf16, #tpu.memory_space<vmem>>, %arg3: memref<8x128xbf16, #tpu.memory_space<vmem>>, %arg4: memref<8x1xf32, #tpu.memory_space<vmem>>) attributes {dimension_semantics = [#tpu.dimension_semantics<parallel>], iteration_bounds = array<i64: 3>, scalar_prefetch = 0 : i64, scratch_operands = 0 : i64, tpu.core_type = #tpu.core_type<tc>, window_params = [{transform_indices = @transform_0, window_bounds = array<i64: 8, 8, 128>}, {transform_indices = @transform_1, window_bounds = array<i64: 8, 128>}, {transform_indices = @transform_2, window_bounds = array<i64: 8, 128>}, {transform_indices = @transform_3, window_bounds = array<i64: 8, 1>}]} {
    %c0 = arith.constant 0 : index
    %c0_0 = arith.constant 0 : index
    %c0_1 = arith.constant 0 : index
    %0 = vector.load %arg1[%c0, %c0_0, %c0_1] : memref<8x8x128xbf16, #tpu.memory_space<vmem>>, vector<8x8x128xbf16>
    %1 = arith.extf %0 : vector<8x8x128xbf16> to vector<8x8x128xf32>
    %c0_2 = arith.constant 0 : index
    %c0_3 = arith.constant 0 : index
    %2 = vector.load %arg2[%c0_2, %c0_3] : memref<8x128xbf16, #tpu.memory_space<vmem>>, vector<8x128xbf16>
    %3 = arith.extf %2 : vector<8x128xbf16> to vector<8x128xf32>
    %c0_4 = arith.constant 0 : index
    %c0_5 = arith.constant 0 : index
    %4 = vector.load %arg3[%c0_4, %c0_5] : memref<8x128xbf16, #tpu.memory_space<vmem>>, vector<8x128xbf16>
    %5 = arith.extf %4 : vector<8x128xbf16> to vector<8x128xf32>
    %6 = vector.shape_cast %3 : vector<8x128xf32> to vector<8x1x128xf32>
    %7 = vector.broadcast %6 : vector<8x1x128xf32> to vector<8x8x128xf32>
    %8 = arith.mulf %1, %7 : vector<8x8x128xf32>
    %cst = arith.constant dense<0.000000e+00> : vector<8x8xf32>
    %9 = vector.multi_reduction <add>, %8, %cst [2] : vector<8x8x128xf32> to vector<8x8xf32>
    %cst_6 = arith.constant 1.000000e+00 : f32
    %10 = vector.broadcast %cst_6 : f32 to vector<8x8xf32>
    %11 = arith.mulf %9, %10 : vector<8x8xf32>
    %cst_7 = arith.constant dense<0xFF800000> : vector<8xf32>
    %12 = vector.multi_reduction <maximumf>, %11, %cst_7 [1] : vector<8x8xf32> to vector<8xf32>
    %13 = vector.shape_cast %12 : vector<8xf32> to vector<8x1xf32>
    %14 = vector.broadcast %13 : vector<8x1xf32> to vector<8x8xf32>
    %15 = arith.subf %11, %14 : vector<8x8xf32>
    %16 = math.exp %15 : vector<8x8xf32>
    %cst_8 = arith.constant dense<0.000000e+00> : vector<8xf32>
    %17 = vector.multi_reduction <add>, %16, %cst_8 [1] : vector<8x8xf32> to vector<8xf32>
    %18 = vector.shape_cast %17 : vector<8xf32> to vector<8x1xf32>
    %19 = tpu.reciprocal %18 {approx = true} : vector<8x1xf32> -> vector<8x1xf32>
    %20 = arith.mulf %18, %19 : vector<8x1xf32>
    %cst_9 = arith.constant 2.000000e+00 : f32
    %21 = vector.broadcast %cst_9 : f32 to vector<8x1xf32>
    %22 = arith.subf %21, %20 : vector<8x1xf32>
    %23 = arith.mulf %19, %22 : vector<8x1xf32>
    %24 = vector.broadcast %23 : vector<8x1xf32> to vector<8x8xf32>
    %25 = arith.mulf %16, %24 : vector<8x8xf32>
    %26 = vector.shape_cast %25 : vector<8x8xf32> to vector<8x8x1xf32>
    %27 = vector.broadcast %26 : vector<8x8x1xf32> to vector<8x8x128xf32>
    %28 = arith.mulf %1, %27 : vector<8x8x128xf32>
    %cst_10 = arith.constant dense<0.000000e+00> : vector<8x128xf32>
    %29 = vector.multi_reduction <add>, %28, %cst_10 [1] : vector<8x8x128xf32> to vector<8x128xf32>
    %cst_11 = arith.constant 1.000000e+00 : f32
    %30 = vector.broadcast %cst_11 : f32 to vector<8x128xf32>
    %31 = arith.mulf %29, %30 : vector<8x128xf32>
    %32 = arith.addf %31, %5 : vector<8x128xf32>
    %33 = arith.mulf %32, %3 : vector<8x128xf32>
    %cst_12 = arith.constant dense<0.000000e+00> : vector<8xf32>
    %34 = vector.multi_reduction <add>, %33, %cst_12 [1] : vector<8x128xf32> to vector<8xf32>
    %35 = vector.shape_cast %34 : vector<8xf32> to vector<8x1xf32>
    %36 = arith.negf %35 : vector<8x1xf32>
    %37 = math.exp %36 : vector<8x1xf32>
    %cst_13 = arith.constant 1.000000e+00 : f32
    %38 = vector.broadcast %cst_13 : f32 to vector<8x1xf32>
    %39 = arith.addf %38, %37 : vector<8x1xf32>
    %40 = arith.divf %38, %39 : vector<8x1xf32>
    %c0_14 = arith.constant 0 : index
    %c0_15 = arith.constant 0 : index
    %41 = vector.load %arg4[%c0_14, %c0_15] : memref<8x1xf32, #tpu.memory_space<vmem>>, vector<8x1xf32>
    tpu.vector_store %arg4[%c0_14, %c0_15], %40 {strides = array<i32>} : memref<8x1xf32, #tpu.memory_space<vmem>>, vector<8x1xf32>,
    return
  }
  func.func @transform_0(%arg0: i32) -> (i32, i32, i32) {
    %c0_i32 = arith.constant 0 : i32
    %c0_i32_0 = arith.constant 0 : i32
    %c0_i32_1 = arith.constant 0 : i32
    return %arg0, %c0_i32, %c0_i32_0 : i32, i32, i32
  }
  func.func @transform_1(%arg0: i32) -> (i32, i32) {
    %c0_i32 = arith.constant 0 : i32
    %c0_i32_0 = arith.constant 0 : i32
    return %arg0, %c0_i32 : i32, i32
  }
  func.func @transform_2(%arg0: i32) -> (i32, i32) {
    %c0_i32 = arith.constant 0 : i32
    %c0_i32_0 = arith.constant 0 : i32
    return %arg0, %c0_i32 : i32, i32
  }
  func.func @transform_3(%arg0: i32) -> (i32, i32) {
    %c0_i32 = arith.constant 0 : i32
    %c0_i32_0 = arith.constant 0 : i32
    return %arg0, %c0_i32 : i32, i32
  }
}

</mosaic_0001>

<bundles_post_ra>
// kernel: tpu_custom_call.1
= control target key start
LH: loop header
LB: loop body
LE: loop exit
PB: predicated region body
PF: predicated region fallthrough
CT: control target
= control target key end

     0   :  { %8 = vsyncpa [#allocation3], 0  ;;  %s1550_s0 = inlined_call_operand.hbm [shape: bf16[24,8,128], index: 0, kind: input, shape index: {}]   ;;  %s1551_s1 = inlined_call_operand.hbm [shape: bf16[24,128], index: 1, kind: input, shape index: {}]   ;;  %s1552_s2 = inlined_call_operand.hbm [shape: bf16[24,128], index: 2, kind: input, shape index: {}]   ;;  %s1553_s3 = inlined_call_operand.vmem [shape: f32[24,1], index: 3, kind: output, shape index: {}]  }
   0x1   :  { %10 = vsyncpa [#allocation3 + $0x1], 0 }
   0x2   :  { %11 = vsyncpa [#allocation5], 0 }
   0x3   :  { %13 = vsyncpa [#allocation5 + $0x1], 0  ;;  %s1199_s12 = smov 0   ;;  %s1201_s13 = smov 0  }
   0x4   :  { %s1203_s14 = smov 0   ;;  %s1205_s15 = smov 0  }
   0x5 LB: > { %s1218_s16 = sadd.s32 4294967295, %s1170_s15   ;;  %s1221_s17 = sadd.s32 1, %s1170_s15   ;;  %s1170_s15 = sphi %s1205_s15, %s1564_s15   ;;  %s1166_s14 = sphi %s1203_s14, %s1563_s14   ;;  %s1162_s13 = sphi %s1201_s13, %s1562_s13   ;;  %s1158_s12 = sphi %s1199_s12, %s1561_s12  }
   0x6   : > { %s23_s18 = ssub.s32 %s1170_s15, %s1221_s17  ;;  %s26_s19 = sadd.s32 1, %s1166_s14 }
   0x7   : > { %p24_p0 = scmp.eq.s32.totalorder %s23_s18, 0  ;;  %p33_p1 = scmp.ne.s32.totalorder %s1166_s14, %s1162_s13 }
   0x8   : > { %p34_p2 = scmp.eq.s32.totalorder %s1170_s15, 0  ;;  %p39_p3 = scmp.ne.s32.totalorder %s1162_s13, %s1158_s12 }
   0x9   : > { %s1231_s20 = scalar_select %p24_p0, %s1166_s14, %s26_s19  }
   0xa   : > { %p35_p4 = por %p34_p2, %p33_p1  ;;  %p40_p5 = scmp.eq.s32.totalorder %s1218_s16, 0 }
   0xb   : > { %p987_p6 = scmp.lt.s32.totalorder %s1170_s15, 3  ;;  %s1240_s22 = sand.u32 1, %s1166_s14  }
   0xc   : > { %p1235_p7 = por %p40_p5, %p39_p3  ;;  %s162_s24 = sand.u32 1, %s1170_s15  }
   0xd   : > { %p1242_p8 = pnand %p987_p6, %p35_p4  ;;  %s939_s25 = sshll.u32 %s1240_s22, 2 }
   0xe   : > { %s1555_s21 = scalar_select %p1235_p7, 1, 0 }
   0xf   : > { %s940_s26 = sshll.u32 %s1170_s15, 6  ;;  %s166_s27 = scalar_lea.vmem [#allocation4], %s939_s25 }
  0x10   : > { %s173_s28 = sshll.u32 %s166_s27, 4  ;;  %s171_s4 = scalar_lea.hbm %s1551_s1, %s940_s26  ;;  %s174_s28 = int_to_ptr.vmem [resolvable:$true] %s173_s28 }
  0x11   : > { %s1256_s5 = scalar_lea.sflag [#allocation5], %s162_s24  ;;  %s1048_s6 = scalar_lea.hbm %s171_s4, 64 }
  0x12   : > { %p1049_p9 = scmp.ne.s32.totalorder %s171_s4, %s1048_s6  ;;  %p1260_p10 = pneg %p1242_p8 }
  0x13   : > { %s1053_s10 = scalar_lea.hbm %s1551_s1, 192  ;;  %p1054_p13 = scmp.lt.s32.totalorder %s171_s4, %s1551_s1 }
  0x14   : > { %p1051_p11 = pnand %p1260_p10, %p1049_p9  ;;  %p1055_p0 = scmp.lt.s32.totalorder %s1053_s10, %s1048_s6 }
  0x16   : > { %p1052_p12 = pneg %p1051_p11  ;;  %p1056_p1 = por %p1055_p0, %p1054_p13 }
  0x18   : > { %p1057_p2 = pnand %p1056_p1, %p1052_p12 }
  0x1a   : > { %1060 = shalt.err (!%p1057_p2)
}
  0x1b   : > { %s1061_s18 = scalar_lea.vmem %s174_s28, 64  ;;  %s1172_s19 = smov [#allocation4]  }
  0x1c   : > { %p1062_p3 = scmp.ne.s32.totalorder %s174_s28, %s1061_s18  ;;  %s1066_s24 = sshll.u32 %s1172_s19, 4  ;;  %s1067_s24 = int_to_ptr.vmem [resolvable:$false] %s1066_s24 }
  0x1d   : > { %s1068_s27 = scalar_lea.vmem %s1067_s24, 128  ;;  %p1069_p6 = scmp.lt.s32.totalorder %s174_s28, %s1067_s24 }
  0x1e   : > { %p1064_p4 = pnand %p1062_p3, %p1260_p10  ;;  %p1070_p9 = scmp.lt.s32.totalorder %s1068_s27, %s1061_s18 }
  0x20   : > { %p1065_p5 = pneg %p1064_p4  ;;  %p1071_p11 = por %p1070_p9, %p1069_p6 }
  0x22   : > { %p1072_p7 = pnand %p1071_p11, %p1065_p5 }
  0x24   : > { %1075 = shalt.err (!%p1072_p7)
}
  0x25   : > { %983 = dma.hbm_to_vmem [thread:$0]  (!%p1242_p8), %s171_s4, 64, %s174_s28, %s1256_s5  }
  0x26   : > { %s1282_s6 = scalar_lea.hbm %s1552_s2, %s940_s26  ;;  %p943_p12 = scmp.ge.s32.totalorder %s1170_s15, 1 }
  0x27   : > { %p196_p13 = scmp.lt.s32.totalorder %s1170_s15, 4  ;;  %s936_s8 = sshll.u32 %s1240_s22, 5 }
  0x28   : > { %s951_s10 = sshll.u32 %s1170_s15, 9  ;;  %s145_s11 = scalar_lea.vmem [#allocation2], %s936_s8 }
  0x29   : > { %p1287_p7 = pnand %p943_p12, %p196_p13  ;;  %s152_s12 = sshll.u32 %s145_s11, 4  ;;  %s1297_s12 = int_to_ptr.vmem [resolvable:$true] %s152_s12 }
  0x2a   : > { %s1295_s28 = scalar_lea.hbm %s1550_s0, %s951_s10  ;;  %s142_s26 = scalar_lea.sflag [#allocation3], %s1240_s22 }
  0x2b   : > { %s1558_s9 = scalar_select %p1287_p7, 1, 0 }
  0x2c   : > { %s1076_s4 = scalar_lea.hbm %s1295_s28, 512  ;;  %s1081_s27 = scalar_lea.hbm %s1550_s0, 1536 }
  0x2d   : > { %p1077_p0 = scmp.ne.s32.totalorder %s1295_s28, %s1076_s4  ;;  %p1082_p3 = scmp.lt.s32.totalorder %s1295_s28, %s1550_s0 }
  0x2e   : > { %p1083_p4 = scmp.lt.s32.totalorder %s1081_s27, %s1076_s4 }
  0x2f   : > { %p1079_p1 = pnand %p1077_p0, %p1260_p10 }
  0x30   : > { %p1084_p5 = por %p1083_p4, %p1082_p3 }
  0x31   : > { %p1080_p2 = pneg %p1079_p1 }
  0x33   : > { %p1085_p6 = pnand %p1084_p5, %p1080_p2 }
  0x35   : > { %1088 = shalt.err (!%p1085_p6)
}
  0x36   : > { %s1089_s8 = scalar_lea.vmem %s1297_s12, 512  ;;  %s1173_s10 = smov [#allocation2]  }
  0x37   : > { %p1090_p9 = scmp.ne.s32.totalorder %s1297_s12, %s1089_s8  ;;  %s1094_s11 = sshll.u32 %s1173_s10, 4  ;;  %s1095_s11 = int_to_ptr.vmem [resolvable:$false] %s1094_s11 }
  0x38   : > { %s1096_s18 = scalar_lea.vmem %s1095_s11, 1024  ;;  %p1097_p13 = scmp.lt.s32.totalorder %s1297_s12, %s1095_s11 }
  0x39   : > { %p1092_p11 = pnand %p1090_p9, %p1260_p10  ;;  %p1098_p0 = scmp.lt.s32.totalorder %s1096_s18, %s1089_s8 }
  0x3b   : > { %p1093_p12 = pneg %p1092_p11  ;;  %p1099_p1 = por %p1098_p0, %p1097_p13 }
  0x3d   : > { %p1100_p7 = pnand %p1099_p1, %p1093_p12 }
  0x3f   : > { %1103 = shalt.err (!%p1100_p7)
}
  0x40   : > { %s1174_s19 = smov 64   ;;  %s1175_s4 = smov 4  }
  0x41   : > { %980 = dma.hbm_to_vmem [thread:$0]  (!%p1242_p8), %s1295_s28, 512, %s1297_s12, %s142_s26, %s1174_s19, %s1174_s19, %s1175_s4  }
  0x42   : > { %s184_s24 = scalar_lea.vmem [#allocation6], %s939_s25  ;;  %s1104_s27 = scalar_lea.hbm %s1282_s6, 64 }
  0x43   : > { %s191_s15 = sshll.u32 %s184_s24, 4  ;;  %p1105_p7 = scmp.ne.s32.totalorder %s1282_s6, %s1104_s27  ;;  %s192_s15 = int_to_ptr.vmem [resolvable:$true] %s191_s15 }
  0x44   : > { %s1109_s8 = scalar_lea.hbm %s1552_s2, 192  ;;  %p1110_p4 = scmp.lt.s32.totalorder %s1282_s6, %s1552_s2 }
  0x45   : > { %p1107_p2 = pnand %p1105_p7, %p1260_p10  ;;  %p1111_p5 = scmp.lt.s32.totalorder %s1109_s8, %s1104_s27 }
  0x47   : > { %p1108_p3 = pneg %p1107_p2  ;;  %p1112_p6 = por %p1111_p5, %p1110_p4 }
  0x49   : > { %p1113_p9 = pnand %p1112_p6, %p1108_p3 }
  0x4b   : > { %1116 = shalt.err (!%p1113_p9)
}
  0x4c   : > { %s1117_s22 = scalar_lea.vmem %s192_s15, 64  ;;  %s1176_s25 = smov [#allocation6]  }
  0x4d   : > { %p1118_p11 = scmp.ne.s32.totalorder %s192_s15, %s1117_s22  ;;  %s1122_s12 = sshll.u32 %s1176_s25, 4  ;;  %s1123_s12 = int_to_ptr.vmem [resolvable:$false] %s1122_s12 }
  0x4e   : > { %s1124_s28 = scalar_lea.vmem %s1123_s12, 128  ;;  %p1125_p0 = scmp.lt.s32.totalorder %s192_s15, %s1123_s12 }
  0x4f   : > { %p1120_p12 = pnand %p1118_p11, %p1260_p10  ;;  %p1126_p1 = scmp.lt.s32.totalorder %s1124_s28, %s1117_s22 }
  0x51   : > { %p1121_p13 = pneg %p1120_p12  ;;  %p1127_p7 = por %p1126_p1, %p1125_p0 }
  0x53   : > { %p1128_p2 = pnand %p1127_p7, %p1121_p13 }
  0x55   : > { %1131 = shalt.err (!%p1128_p2)
}
  0x56   : > { %986 = dma.hbm_to_vmem [thread:$0]  (!%p1242_p8), %s1282_s6, 64, %s192_s15, %s1256_s5  }
  0x57   : > { %p1559_p3 = scmp.ne.s32.totalorder %s1558_s9, 0 }
  0x58   : > { %s1344_s7 = sand.u32 (!%p1559_p3), 1, %s1162_s13   ;;  %p1560_p10 = scmp.ne.s32.totalorder (!%p1559_p3), %s1555_s21, 0 }
  0x59   : > { %200 = sbr.rel (%p1559_p3) target bundleno = 1085 (0x43d), region = 32  ;;  %s944_s26 = sshll.u32 (!%p1559_p3), %s1344_s7, 5 }
  0x5a   : > { %s203_s18 = scalar_lea.sflag (!%p1559_p3), [#allocation3], %s1344_s7  ;;  %s1348_s19 = scalar_lea.vmem (!%p1559_p3), [#allocation2], %s944_s26 }
  0x5e   : > { %1149 = dma.done.wait (%p1560_p10), %s203_s18, 512  }
  0x5f   : > { %1151 = vsyncadd (%p1560_p10), %s203_s18, 4294966784  ;;  %s211_s23 = sand.u32 1, %s1218_s16   ;;  %s945_s5 = sshll.u32 %s1344_s7, 2 }
  0x60   : > { %s212_s6 = scalar_lea.sflag [#allocation5], %s211_s23  ;;  %s215_s9 = scalar_lea.vmem [#allocation4], %s945_s5 }
  0x61   : > { %1153 = dma.done.wait (%p1560_p10), %s212_s6, 128  }
  0x62   : > { %1155 = vsyncadd (%p1560_p10), %s212_s6, 4294967168  ;;  %v286_v0 = vlaneseq  ;;  %v1177_v1 = vmov 1966171168   ;;  %v277_v8 = vld [vmem:[%s215_s9] sm:$0xf]  ;;  %v1378_v13 = vld [vmem:[%s1348_s19 + $0x8] sm:$0xff]  }
  0x63   : > { %v284_v2 = vunpack.c.l.s4 %v1177_v1  ;;  %v1368_v9 = vunpack.c.l.bf16 %v277_v8  ;;  %v1371_v10 = vld [vmem:[%s1348_s19] sm:$0xff]   ;;  %v958_v19 = vunpack.c.l.bf16 %v1378_v13  ;;  %v1387_v24 = vld [vmem:[%s1348_s19 + $0x10] sm:$0xff]   ;;  %v959_v26 = vunpack.c.h.bf16 %v1378_v13  ;;  %v1402_v39 = vld [vmem:[%s1348_s19 + $0x18] sm:$0xff]   ;;  %s224_s21 = scalar_lea.vmem [#allocation6], %s945_s5  ;;  %p257_p8 = scmp.lt.s32.totalorder %s1218_s16, 2 }
  0x64   : > { %v1362_v3 = vshrl.u32 %v286_v0, 7  ;;  %v404_v4 = vand.u32 127, %v286_v0  ;;  %v954_v15 = vunpack.c.l.bf16 %v1371_v10  ;;  %v955_v20 = vunpack.c.h.bf16 %v1371_v10 }
  0x65   : > { %v285_v5 = vunpack.c.0.s8 %v284_v2  ;;  %v282_v14 = vcombine.high %v1368_v9, %v1368_v9  ;;  %v962_v32 = vunpack.c.l.bf16 %v1387_v24  ;;  %v963_v41 = vunpack.c.h.bf16 %v1387_v24  ;;  %s1566_s16 = smov (!%p257_p8, %s1218_s16), 2 }
  0x66   : > { %v1365_v6 = vsub.s32 %v404_v4, %v1362_v3  ;;  %v1375_v12 = vsub.s32 0, %v1362_v3  ;;  %v966_v45 = vunpack.c.l.bf16 %v1402_v39  ;;  %v967_v48 = vunpack.c.h.bf16 %v1402_v39  ;;  %s947_s4 = sshll.u32 %s1566_s16, 3 }
  0x67   : > { %v288_v7 = vsub.s32 %v285_v5, %v1362_v3  ;;  %vm437_vm0 = vcmask 1041409   ;;  %vm439_vm1 = vcmask 1042434   ;;  %vm441_vm2 = vcmask 1043459   ;;  %s260_s27 = scalar_lea.vmem %s1553_s3, %s947_s4 }
  0x68   : > { %vm443_vm3 = vcmask 1044484   ;;  %vm445_vm4 = vcmask 1045509   ;;  %vm447_vm5 = vcmask 1046534   ;;  %vm449_vm6 = vcmask 1047559  }
  0x69   : > { %v289_v11 = vrot.slane %v1368_v9, %v288_v7  ;;  %v296_v18 = vrot.slane %v282_v14, %v288_v7  ;;  %vm452_vm7 = vcmask 64512   ;;  %vm823_vm8 = vcmask 7168  }
  0x6b   : > { %v305_v16 = vrot.slane %v289_v11, %v288_v7  ;;  %v297_v17 = vcombine.high %v289_v11, %v289_v11  ;;  %v312_v25 = vrot.slane %v296_v18, %v288_v7  ;;  %v298_v27 = vcombine.high %v296_v18, %v296_v18 }
  0x6d   : > { %v334_v21 = vrot.slane %v305_v16, %v1375_v12  ;;  %v327_v22 = vcombine.high %v305_v16, %v305_v16  ;;  %v319_v23 = vrot.slane %v297_v17, %v288_v7  ;;  %v350_v33 = vrot.slane %v312_v25, %v1375_v12 }
  0x6e   : > { %v326_v34 = vrot.slane %v298_v27, %v288_v7  ;;  %v328_v38 = vcombine.high %v312_v25, %v312_v25  ;;  %v471_v25 = vsub.s32 3, %v1362_v3 }
  0x6f   : > { %v371_v28 = vmul.f32 %v954_v15, %v334_v21  ;;  %v342_v29 = vrot.slane %v327_v22, %v1375_v12  ;;  %v338_v30 = vrot.slane %v319_v23, %v1375_v12  ;;  %v329_v31 = vcombine.high %v319_v23, %v319_v23 }
  0x70   : > { %v354_v42 = vrot.slane %v326_v34, %v1375_v12  ;;  %v330_v43 = vcombine.high %v326_v34, %v326_v34  ;;  %v375_v44 = vmul.f32 %v962_v32, %v350_v33  ;;  %v358_v46 = vrot.slane %v328_v38, %v1375_v12 }
  0x71   : > { %379 = vadd.xlane.f32.xlu0 %v371_v28  ;;  %v373_v35 = vmul.f32 %v958_v19, %v342_v29  ;;  %v372_v36 = vmul.f32 %v955_v20, %v338_v30  ;;  %v346_v37 = vrot.slane %v329_v31, %v1375_v12  ;;  %v1178_v21 = vmov 0  }
  0x72   : > { %v376_v47 = vmul.f32 %v963_v41, %v354_v42  ;;  %v362_v49 = vrot.slane %v330_v43, %v1375_v12  ;;  %v377_v50 = vmul.f32 %v966_v45, %v358_v46  ;;  %1025 = vset.pattern.permute.xlu0 %v1178_v21  ;;  %1024 = vset.pattern.permute.xlu1 %v1178_v21  ;;  %v463_v22 = vsub.s32 1, %v1362_v3 }
  0x73   : > { %383 = vadd.xlane.f32.xlu1 %v373_v35  ;;  %v374_v40 = vmul.f32 %v959_v26, %v346_v37  ;;  %v467_v23 = vsub.s32 2, %v1362_v3  ;;  %v475_v31 = vsub.s32 4, %v1362_v3  ;;  %v483_v46 = vsub.s32 6, %v1362_v3 }
  0x74   : > { %v378_v51 = vmul.f32 %v967_v48, %v362_v49 }
  0x75   : > { %381 = vadd.xlane.f32.xlu0 %v372_v36 }
  0x77   : > { %385 = vadd.xlane.f32.xlu1 %v374_v40  ;;  %v479_v40 = vsub.s32 5, %v1362_v3 }
  0x79   : > { %387 = vadd.xlane.f32.xlu0 %v375_v44 }
  0x7b   : > { %389 = vadd.xlane.f32.xlu1 %v376_v47 }
  0x7d   : > { %391 = vadd.xlane.f32.xlu0 %v377_v50 }
  0x7f   : > { %393 = vadd.xlane.f32.xlu1 %v378_v51  ;;  %v487_v51 = vsub.s32 7, %v1362_v3 }
  0xfa   : > { %v380_v52 = vpop.xlane.xlu0 %379 }
  0xfb   : > { %v408_v55 = vrot.slane %v380_v52, %v1365_v6 }
  0xfc   : > { %v384_v53 = vpop.xlane.xlu1 %383 }
  0xfd   : > { %v416_v57 = vrot.slane %v384_v53, %v1365_v6 }
  0xfe   : > { %v382_v54 = vpop.xlane.xlu0 %381 }
  0xff   : > { %v412_v56 = vrot.slane %v382_v54, %v1365_v6 }
 0x100   : > { %v386_v58 = vpop.xlane.xlu1 %385 }
 0x101   : > { %v438_v59 = vsel %vm437_vm0, %v412_v56, %v408_v55  ;;  %v420_v60 = vrot.slane %v386_v58, %v1365_v6 }
 0x102   : > { %v440_v61 = vsel %vm439_vm1, %v416_v57, %v438_v59  ;;  %v388_v62 = vpop.xlane.xlu0 %387 }
 0x103   : > { %v442_v63 = vsel %vm441_vm2, %v420_v60, %v440_v61  ;;  %v424_v0 = vrot.slane %v388_v62, %v1365_v6 }
 0x104   : > { %v390_v1 = vpop.xlane.xlu1 %389 }
 0x105   : > { %v444_v2 = vsel %vm443_vm3, %v424_v0, %v442_v63  ;;  %v428_v4 = vrot.slane %v390_v1, %v1365_v6 }
 0x106   : > { %v392_v5 = vpop.xlane.xlu0 %391 }
 0x107   : > { %v432_v7 = vrot.slane %v392_v5, %v1365_v6  ;;  %v446_v8 = vsel %vm445_vm4, %v428_v4, %v444_v2 }
 0x108   : > { %v394_v11 = vpop.xlane.xlu1 %393 }
 0x109   : > { %v436_v14 = vrot.slane %v394_v11, %v1365_v6  ;;  %v448_v16 = vsel %vm447_vm5, %v432_v7, %v446_v8 }
 0x10b   : > { %v450_v17 = vsel %vm449_vm6, %v436_v14, %v448_v16 }
 0x10c   : > { %v453_v18 = vsel %vm452_vm7, %v450_v17, -inf }
 0x10d   : > { %454 = vmax.xlane.f32.xlu0 %v453_v18 }
 0x196   : > { %v455_v27 = vpop.xlane.xlu0 %454 }
 0x197   : > { %v460_v28 = vrot.slane %v455_v27, %v1375_v12  ;;  %v464_v29 = vrot.slane %v455_v27, %v463_v22  ;;  %v468_v30 = vrot.slane %v455_v27, %v467_v23  ;;  %v472_v33 = vrot.slane %v455_v27, %v471_v25 }
 0x198   : > { %v476_v42 = vrot.slane %v455_v27, %v475_v31  ;;  %v480_v47 = vrot.slane %v455_v27, %v479_v40  ;;  %v488_v55 = vrot.slane %v455_v27, %v487_v51 }
 0x199   : > { %v497_v34 = vsub.f32 %v380_v52, %v460_v28  ;;  %v498_v35 = vsub.f32 %v382_v54, %v464_v29  ;;  %v499_v36 = vsub.f32 %v384_v53, %v468_v30  ;;  %v500_v43 = vsub.f32 %v386_v58, %v472_v33 }
 0x19a   : > { %v501_v49 = vsub.f32 %v388_v62, %v476_v42  ;;  %v484_v52 = vrot.slane %v455_v27, %v483_v46  ;;  %v502_v53 = vsub.f32 %v390_v1, %v480_v47  ;;  %v504_v60 = vsub.f32 %v394_v11, %v488_v55 }
 0x19b   : > { %v505_v37 = vmul.f32 1.442695, %v497_v34  ;;  %v507_v38 = vmul.f32 1.442695, %v498_v35  ;;  %v509_v44 = vmul.f32 1.442695, %v499_v36 }
 0x19c   : > { %v511_v50 = vmul.f32 1.442695, %v500_v43  ;;  %v513_v54 = vmul.f32 1.442695, %v501_v49  ;;  %v503_v56 = vsub.f32 %v392_v5, %v484_v52  ;;  %v515_v57 = vmul.f32 1.442695, %v502_v53 }
 0x19d   : > { %1026 = vpow2.f32 %v505_v37  ;;  %v519_v63 = vmul.f32 1.442695, %v504_v60 }
 0x19e   : > { %1028 = vpow2.f32 %v507_v38  ;;  %v517_v61 = vmul.f32 1.442695, %v503_v56 }
 0x19f   : > { %1030 = vpow2.f32 %v509_v44 }
 0x1a0   : > { %1032 = vpow2.f32 %v511_v50 }
 0x1a1   : > { %1034 = vpow2.f32 %v513_v54 }
 0x1a2   : > { %1036 = vpow2.f32 %v515_v57 }
 0x1a3   : > { %1038 = vpow2.f32 %v517_v61 }
 0x1a4   : > { %1040 = vpow2.f32 %v519_v63 }
 0x1aa   : > { %v1027_v58 = vpop.eup %1026 }
 0x1ab   : > { %v1029_v59 = vpop.eup %1028  ;;  %530 = vperm.xlu1 %1024, %v1027_v58  }
 0x1ac   : > { %533 = vperm.xlu0 %1025, %v1029_v59   ;;  %v1031_v62 = vpop.eup %1030 }
 0x1ad   : > { %v1033_v0 = vpop.eup %1032 }
 0x1ae   : > { %v1035_v1 = vpop.eup %1034 }
 0x1af   : > { %536 = vperm.xlu1 %1024, %v1031_v62   ;;  %v1037_v2 = vpop.eup %1036 }
 0x1b0   : > { %v1039_v4 = vpop.eup %1038 }
 0x1b1   : > { %v1041_v5 = vpop.eup %1040 }
 0x1b3   : > { %539 = vperm.xlu1 %1024, %v1033_v0  }
 0x1b7   : > { %542 = vperm.xlu1 %1024, %v1035_v1  }
 0x1bb   : > { %545 = vperm.xlu1 %1024, %v1037_v2  }
 0x1bf   : > { %548 = vperm.xlu1 %1024, %v1039_v4  }
 0x1c3   : > { %551 = vperm.xlu1 %1024, %v1041_v5  }
 0x226   : > { %v531_v7 = vpop.permute.xlu1 %530 }
 0x227   : > { %v534_v16 = vpop.permute.xlu0 %533  ;;  %v556_v21 = vrot.slane %v531_v7, %v1365_v6 }
 0x228   : > { %v560_v18 = vrot.slane %v534_v16, %v1365_v6 }
 0x22a   : > { %v537_v8 = vpop.permute.xlu1 %536  ;;  %v585_v33 = vsel %vm437_vm0, %v560_v18, %v556_v21 }
 0x22b   : > { %v564_v27 = vrot.slane %v537_v8, %v1365_v6 }
 0x22d   : > { %v586_v35 = vsel %vm439_vm1, %v564_v27, %v585_v33 }
 0x22e   : > { %v540_v11 = vpop.permute.xlu1 %539 }
 0x22f   : > { %v568_v28 = vrot.slane %v540_v11, %v1365_v6 }
 0x231   : > { %v587_v37 = vsel %vm441_vm2, %v568_v28, %v586_v35 }
 0x232   : > { %v543_v14 = vpop.permute.xlu1 %542 }
 0x233   : > { %v572_v29 = vrot.slane %v543_v14, %v1365_v6 }
 0x235   : > { %v588_v38 = vsel %vm443_vm3, %v572_v29, %v587_v37 }
 0x236   : > { %v546_v17 = vpop.permute.xlu1 %545 }
 0x237   : > { %v576_v34 = vrot.slane %v546_v17, %v1365_v6 }
 0x239   : > { %v589_v43 = vsel %vm445_vm4, %v576_v34, %v588_v38  ;;  %v279_v34 = vld [vmem:[%s224_s21] sm:$0xf] }
 0x23a   : > { %v549_v30 = vpop.permute.xlu1 %548 }
 0x23b   : > { %v580_v36 = vrot.slane %v549_v30, %v1365_v6 }
 0x23d   : > { %v590_v47 = vsel %vm447_vm5, %v580_v36, %v589_v43  ;;  %v1503_v43 = vunpack.c.l.bf16 %v279_v34 }
 0x23e   : > { %v552_v42 = vpop.permute.xlu1 %551 }
 0x23f   : > { %v584_v44 = vrot.slane %v552_v42, %v1365_v6  ;;  %v746_v24 = vrot.slane %v1503_v43, 1 }
 0x241   : > { %v591_v49 = vsel %vm449_vm6, %v584_v44, %v590_v47 }
 0x242   : > { %v593_v50 = vsel %vm452_vm7, %v591_v49, 0.0 }
 0x243   : > { %594 = vadd.xlane.f32.xlu1 %v593_v50 }
 0x2cc   : > { %v595_v52 = vpop.xlane.xlu1 %594 }
 0x2cd   : > { %1042 = vrcp.f32 %v595_v52 }
 0x2da   : > { %v1043_v53 = vpop.eup %1042 }
 0x2db   : > { %v597_v54 = vmul.f32 %v1043_v53, %v595_v52 }
 0x2dd   : > { %v598_v55 = vsub.f32 2.0, %v597_v54 }
 0x2df   : > { %v599_v56 = vmul.f32 %v1043_v53, %v598_v55  ;;  %v769_v55 = vrot.slane %v1368_v9, 1 }
 0x2e1   : > { %v608_v57 = vrot.slane %v599_v56, %v463_v22  ;;  %v612_v6 = vrot.slane %v599_v56, %v467_v23  ;;  %v604_v63 = vrot.slane %v599_v56, %v1375_v12  ;;  %v616_v8 = vrot.slane %v599_v56, %v471_v25 }
 0x2e2   : > { %v620_v14 = vrot.slane %v599_v56, %v475_v31  ;;  %v628_v12 = vrot.slane %v599_v56, %v483_v46  ;;  %v632_v25 = vrot.slane %v599_v56, %v487_v51 }
 0x2e3   : > { %v642_v60 = vmul.f32 %v1029_v59, %v608_v57  ;;  %v643_v61 = vmul.f32 %v1031_v62, %v612_v6  ;;  %v641_v7 = vmul.f32 %v1027_v58, %v604_v63  ;;  %v644_v11 = vmul.f32 %v1033_v0, %v616_v8 }
 0x2e4   : > { %v645_v22 = vmul.f32 %v1035_v1, %v620_v14  ;;  %v624_v59 = vrot.slane %v599_v56, %v479_v40  ;;  %v647_v58 = vmul.f32 %v1039_v4, %v628_v12  ;;  %v648_v62 = vmul.f32 %v1041_v5, %v632_v25 }
 0x2e5   : > { %656 = vperm.xlu0 %1025, %v642_v60   ;;  %v749_v12 = vrot.slane %v1503_v43, 4  ;;  %v750_v25 = vrot.slane %v1503_v43, 5 }
 0x2e6   : > { %v646_v23 = vmul.f32 %v1037_v2, %v624_v59 }
 0x2e9   : > { %661 = vperm.xlu0 %1025, %v643_v61   ;;  %v747_v61 = vrot.slane %v1503_v43, 2 }
 0x2ed   : > { %651 = vperm.xlu0 %1025, %v641_v7   ;;  %v748_v7 = vrot.slane %v1503_v43, 3 }
 0x2f1   : > { %666 = vperm.xlu0 %1025, %v644_v11  }
 0x2f5   : > { %671 = vperm.xlu0 %1025, %v645_v22  }
 0x2f9   : > { %676 = vperm.xlu0 %1025, %v646_v23  }
 0x2fd   : > { %681 = vperm.xlu0 %1025, %v647_v58  }
 0x301   : > { %686 = vperm.xlu0 %1025, %v648_v62  }
 0x360   : > { %v657_v0 = vpop.permute.xlu0 %656 }
 0x361   : > { %v690_v31 = vmul.f32 %v955_v20, %v657_v0 }
 0x363   : > { %v703_v2 = vrot.slane %v690_v31, 4 }
 0x364   : > { %v662_v1 = vpop.permute.xlu0 %661 }
 0x365   : > { %v691_v40 = vmul.f32 %v958_v19, %v662_v1  ;;  %v704_v3 = vadd.f32 %v703_v2, %v690_v31 }
 0x367   : > { %v709_v4 = vrot.slane %v691_v40, 4  ;;  %v705_v20 = vrot.slane %v704_v3, 2 }
 0x368   : > { %v652_v16 = vpop.permute.xlu0 %651 }
 0x369   : > { %v689_v46 = vmul.f32 %v954_v15, %v652_v16  ;;  %v710_v21 = vadd.f32 %v709_v4, %v691_v40  ;;  %v706_v15 = vadd.f32 %v705_v20, %v704_v3  ;;  %v770_v40 = vrot.slane %v1368_v9, 2 }
 0x36a   : > { %v771_v16 = vrot.slane %v1368_v9, 3 }
 0x36b   : > { %v697_v51 = vrot.slane %v689_v46, 4  ;;  %v711_v30 = vrot.slane %v710_v21, 2  ;;  %v707_v44 = vrot.slane %v706_v15, 1 }
 0x36c   : > { %v667_v17 = vpop.permute.xlu0 %666 }
 0x36d   : > { %v698_v5 = vadd.f32 %v697_v51, %v689_v46  ;;  %v692_v18 = vmul.f32 %v959_v26, %v667_v17  ;;  %v712_v38 = vadd.f32 %v711_v30, %v710_v21  ;;  %v772_v46 = vrot.slane %v1368_v9, 4 }
 0x36f   : > { %v715_v27 = vrot.slane %v692_v18, 4  ;;  %v699_v28 = vrot.slane %v698_v5, 2  ;;  %v713_v56 = vrot.slane %v712_v38, 1 }
 0x370   : > { %v672_v29 = vpop.permute.xlu0 %671 }
 0x371   : > { %v716_v19 = vadd.f32 %v715_v27, %v692_v18  ;;  %v693_v10 = vmul.f32 %v962_v32, %v672_v29  ;;  %v700_v35 = vadd.f32 %v699_v28, %v698_v5  ;;  %v714_v23 = vadd.f32 %v713_v56, %v712_v38 }
 0x372   : > { %v751_v5 = vrot.slane %v1503_v43, 6  ;;  %v773_v18 = vrot.slane %v1368_v9, 5  ;;  %v774_v29 = vrot.slane %v1368_v9, 6  ;;  %v775_v38 = vrot.slane %v1368_v9, 7 }
 0x373   : > { %v717_v33 = vrot.slane %v716_v19, 2  ;;  %v721_v36 = vrot.slane %v693_v10, 4  ;;  %v701_v49 = vrot.slane %v700_v35, 1  ;;  %v763_v51 = vadd.f32 %v747_v61, %v714_v23 }
 0x374   : > { %v677_v37 = vpop.permute.xlu0 %676 }
 0x375   : > { %v718_v13 = vadd.f32 %v717_v33, %v716_v19  ;;  %v694_v26 = vmul.f32 %v963_v41, %v677_v37  ;;  %v722_v42 = vadd.f32 %v721_v36, %v693_v10  ;;  %v708_v41 = vadd.f32 %v707_v44, %v706_v15 }
 0x376   : > { %v702_v63 = vadd.f32 %v701_v49, %v700_v35  ;;  %v786_v33 = vmul.f32 %v770_v40, %v763_v51  ;;  %v752_v35 = vrot.slane %v1503_v43, 7 }
 0x377   : > { %v727_v47 = vrot.slane %v694_v26, 4  ;;  %v723_v32 = vrot.slane %v722_v42, 2  ;;  %v719_v52 = vrot.slane %v718_v13, 1  ;;  %v762_v62 = vadd.f32 %v746_v24, %v708_v41 }
 0x378   : > { %v682_v50 = vpop.permute.xlu0 %681  ;;  %v761_v2 = vadd.f32 %v702_v63, %v1503_v43 }
 0x379   : > { %v728_v53 = vadd.f32 %v727_v47, %v694_v26  ;;  %v695_v54 = vmul.f32 %v966_v45, %v682_v50  ;;  %v724_v57 = vadd.f32 %v723_v32, %v722_v42  ;;  %v720_v14 = vadd.f32 %v719_v52, %v718_v13 }
 0x37a   : > { %v785_v21 = vmul.f32 %v769_v55, %v762_v62  ;;  %v784_v19 = vmul.f32 %v761_v2, %v1368_v9  ;;  %v802_v32 = vrot.slane %v786_v33, 6 }
 0x37b   : > { %v729_v60 = vrot.slane %v728_v53, 2  ;;  %v733_v6 = vrot.slane %v695_v54, 4  ;;  %v725_v8 = vrot.slane %v724_v57, 1  ;;  %v764_v39 = vadd.f32 %v748_v7, %v720_v14 }
 0x37c   : > { %v687_v11 = vpop.permute.xlu0 %686  ;;  %v800_v36 = vrot.slane %v785_v21, 7 }
 0x37d   : > { %v730_v22 = vadd.f32 %v729_v60, %v728_v53  ;;  %v734_v59 = vadd.f32 %v733_v6, %v695_v54  ;;  %v696_v45 = vmul.f32 %v967_v48, %v687_v11  ;;  %v726_v58 = vadd.f32 %v725_v8, %v724_v57 }
 0x37e   : > { %v787_v30 = vmul.f32 %v771_v16, %v764_v39  ;;  %v801_v49 = vsel %vm437_vm0, %v800_v36, %v784_v19 }
 0x37f   : > { %v731_v0 = vrot.slane %v730_v22, 1  ;;  %v735_v31 = vrot.slane %v734_v59, 2  ;;  %v739_v1 = vrot.slane %v696_v45, 4  ;;  %v765_v17 = vadd.f32 %v749_v12, %v726_v58 }
 0x380   : > { %v804_v42 = vrot.slane %v787_v30, 5  ;;  %v803_v54 = vsel %vm439_vm1, %v802_v32, %v801_v49 }
 0x381   : > { %v732_v48 = vadd.f32 %v731_v0, %v730_v22  ;;  %v736_v4 = vadd.f32 %v735_v31, %v734_v59  ;;  %v740_v3 = vadd.f32 %v739_v1, %v696_v45  ;;  %v788_v34 = vmul.f32 %v772_v46, %v765_v17 }
 0x382   : > { %v805_v56 = vsel %vm441_vm2, %v804_v42, %v803_v54 }
 0x383   : > { %v766_v20 = vadd.f32 %v750_v25, %v732_v48  ;;  %v737_v27 = vrot.slane %v736_v4, 1  ;;  %v741_v28 = vrot.slane %v740_v3, 2  ;;  %v806_v50 = vrot.slane %v788_v34, 4 }
 0x385   : > { %v738_v10 = vadd.f32 %v737_v27, %v736_v4  ;;  %v742_v15 = vadd.f32 %v741_v28, %v740_v3  ;;  %v789_v26 = vmul.f32 %v773_v18, %v766_v20  ;;  %v807_v57 = vsel %vm443_vm3, %v806_v50, %v805_v56 }
 0x387   : > { %v767_v37 = vadd.f32 %v751_v5, %v738_v10  ;;  %v743_v13 = vrot.slane %v742_v15, 1  ;;  %v808_v53 = vrot.slane %v789_v26, 3 }
 0x389   : > { %v744_v44 = vadd.f32 %v743_v13, %v742_v15  ;;  %v790_v47 = vmul.f32 %v774_v29, %v767_v37  ;;  %v809_v9 = vsel %vm445_vm4, %v808_v53, %v807_v57 }
 0x38b   : > { %v768_v52 = vadd.f32 %v752_v35, %v744_v44  ;;  %v810_v55 = vrot.slane %v790_v47, 2 }
 0x38d   : > { %v791_v43 = vmul.f32 %v775_v38, %v768_v52  ;;  %v811_v41 = vsel %vm447_vm5, %v810_v55, %v809_v9 }
 0x38f   : > { %v812_v24 = vrot.slane %v791_v43, 1 }
 0x391   : > { %v813_v60 = vsel %vm449_vm6, %v812_v24, %v811_v41 }
 0x392   : > { %815 = vadd.xlane.f32.xlu1 %v813_v60 }
 0x41b   : > { %v816_v6 = vpop.xlane.xlu1 %815 }
 0x41c   : > { %v948_v61 = vmul.f32 -1.442695, %v816_v6 }
 0x41e   : > { %1044 = vpow2.f32 %v948_v61 }
 0x42b   : > { %v1045_v63 = vpop.eup %1044 }
 0x42c   : > { %v820_v7 = vadd.f32 1.0, %v1045_v63 }
 0x42e   : > { %1046 = vrcp.f32 %v820_v7 }
 0x43b   : > { %v1047_v8 = vpop.eup %1046 }
 0x43c   : > { %824 = vst.msk [vmem:[%s260_s27] sm:$0xff] %vm823_vm8, %v1047_v8 }
 0x43d PF: > { %p16_p4 = scmp.ge.s32.totalorder %s1221_s17, 5   ;;  %s1561_s12 = smov %s1162_s13 }
 0x43e   : > { %s1562_s13 = smov %s1166_s14  ;;  %s1563_s14 = smov %s1231_s20 }
 0x43f   : > { %s1564_s15 = smov %s1221_s17  ;;  %18 = sbr.rel (!%p16_p4) target bundleno = 5 (0x5), region = 96 }
 0x444   :  { %844 = vsyncpa [#allocation3], 1 }
 0x445   :  { %846 = vsyncpa [#allocation3 + $0x1], 1 }
 0x446   :  { %847 = vsyncpa [#allocation5], 1 }
 0x447   :  { %849 = vsyncpa [#allocation5 + $0x1], 1 }

</bundles_post_ra>
